<compile_context>
chip_gen: v7x
topology: tpu7x:2x2x1
jax: 0.10.0
libtpu: 0.0.40
codegen_flags: <defaults>
</compile_context>

<pallas_src>
import functools

import jax
import jax.numpy as jnp
from jax.experimental import pallas as pl
from jax.experimental.pallas import tpu as pltpu

_LANE = 128
_SUBLANE = 8


def _vmem_capacity_bytes():
    try:
        return int(pltpu.get_tpu_info().vmem_capacity_bytes)
    except Exception:
        return 64 << 20  # conservative fallback: v7x per-TensorCore VMEM


def _compiler_params(dimension_semantics, vmem_need_bytes):
    clamp = (_vmem_capacity_bytes() * 4) // 5            # leave Mosaic headroom
    limit = int(min(max(int(vmem_need_bytes), 16 << 20), clamp))
    return pltpu.CompilerParams(
        dimension_semantics=dimension_semantics,
        vmem_limit_bytes=limit,
    )


# ------------------------------- fused path ----------------------------------
def _ca_fused_kernel(x_ref, a_ref, w1t_ref, w2t_ref, o_ref, *, inv_hw):
    # x_ref  : VMEM (nb, C, HW)   input dtype (HW = full spatial extent)
    # a_ref  : VMEM (1, C//2) f32 PReLU slope (scalar broadcast or per-channel)
    # w1t_ref: VMEM (C, C//2) f32 (= W1^T)
    # w2t_ref: VMEM (C//2, C) f32 (= W2^T)
    # AdaptiveAvgPool2d(1): spatial mean, accumulated in f32.  Lane padding of
    # a full-extent block is masked by Mosaic, so the sum covers exactly HW.
    pooled = jnp.sum(x_ref[...], axis=-1, dtype=jnp.float32) * inv_hw       # (nb, C)
    y1 = jnp.dot(pooled, w1t_ref[...], preferred_element_type=jnp.float32)  # (nb, C//2)
    y1 = jnp.where(y1 >= 0.0, y1, a_ref[...] * y1)                          # PReLU
    y2 = jnp.dot(y1, w2t_ref[...], preferred_element_type=jnp.float32)      # (nb, C)
    gate = jax.nn.sigmoid(y2).astype(x_ref.dtype)                           # (nb, C)
    # Re-read x_ref instead of keeping the slab value live across the gate math.
    o_ref[...] = (x_ref[...] * gate[:, :, None]).astype(o_ref.dtype)


# ---------------------------- two-pass fallback -------------------------------
def _pool_sum_kernel(x_ref, s_ref, *, hw, tile_hw, needs_mask):
    # Accumulate spatial sums into the (1, C, 1) f32 output block, resident
    # across the (last, "arbitrary") HW grid axis.
    t = pl.program_id(1)

    @pl.when(t == 0)
    def _():
        s_ref[...] = jnp.zeros_like(s_ref)

    xb = x_ref[...].astype(jnp.float32)                  # (1, C, tile_hw)
    if needs_mask:  # static: only emitted when hw % tile_hw != 0
        lane = jax.lax.broadcasted_iota(jnp.int32, xb.shape, dimension=2)
        xb = jnp.where(t * tile_hw + lane < hw, xb, 0.0)
    s_ref[...] += jnp.sum(xb, axis=-1, keepdims=True)


def _apply_gate_kernel(x_ref, g_ref, o_ref):
    # g_ref: (1, C, 1) f32 gate, block constant across the HW grid axis.
    # Partial last-tile output stores are auto-masked; no explicit mask needed.
    o_ref[...] = (x_ref[...] * g_ref[...].astype(x_ref.dtype)).astype(o_ref.dtype)


# --------------------------------- wrapper ------------------------------------
def ca_layer(x_nchw, w1, w2, prelu_a, *, force_two_pass=False, two_pass_tile_hw=None):
    """Channel attention: sigmoid(W2 @ prelu(W1 @ avgpool(x))) * x.

    x_nchw: (N, C, H, W); w1: (C//2, C); w2: (C, C//2);
    prelu_a: scalar or (C//2,) PReLU slope.
    """
    N, C, H, W = x_nchw.shape
    hw = H * W
    dtype = x_nchw.dtype
    itemsize = jnp.dtype(dtype).itemsize
    c2 = w2.shape[1]

    # Trailing-dim merges/splits are layout-preserving (no extra HBM pass).
    x_flat = x_nchw.reshape(N, C, hw)
    w1t = jnp.asarray(w1, jnp.float32).T                  # (C, C//2)
    w2t = jnp.asarray(w2, jnp.float32).T                  # (C//2, C)
    a_arr = jnp.broadcast_to(
        jnp.asarray(prelu_a, jnp.float32).reshape(1, -1), (1, c2))
    inv_hw = 1.0 / float(hw)

    # VMEM footprint accounting uses the padded on-chip layout.
    c_pad = -(-C // _SUBLANE) * _SUBLANE
    hw_lane = -(-hw // _LANE) * _LANE
    slab_vmem = c_pad * hw_lane * itemsize                # one sample's block in VMEM

    vmem_clamp = (_vmem_capacity_bytes() * 4) // 5
    fused_cutoff = vmem_clamp // 5                        # ~10 MiB v7x, ~20 MiB v5e/v6e

    # ---- fused path: pool + gate + multiply in one pass (1R + 1W of x) ----
    if not force_two_pass and slab_vmem <= fused_cutoff:
        # Batch nb samples per grid step (amortize per-step overhead, fill
        # vregs); keep >= 2 grid steps when N allows for the v7x megacore.
        target = 4 << 20
        nb = max(1, min(N, target // max(1, slab_vmem)))
        if N >= 2:
            nb = min(nb, -(-N // 2))
        grid_n = -(-N // nb)
        block_vmem = nb * slab_vmem
        # TODO(synk): for C < 8 a 2-D (N*C, HW) layout would avoid sublane
        # padding (halves VMEM/VPU work); HBM traffic is identical so the
        # simpler (nb, C, HW) layout is kept.  N==1 on v7x leaves one TC idle.
        out_flat = pl.pallas_call(
            functools.partial(_ca_fused_kernel, inv_hw=inv_hw),
            out_shape=jax.ShapeDtypeStruct((N, C, hw), dtype),
            grid=(grid_n,),
            in_specs=[
                pl.BlockSpec((nb, C, hw), lambda n: (n, 0, 0)),   # x (full HW, no pad)
                pl.BlockSpec((1, c2), lambda n: (0, 0)),          # PReLU slope
                pl.BlockSpec((C, c2), lambda n: (0, 0)),          # W1^T
                pl.BlockSpec((c2, C), lambda n: (0, 0)),          # W2^T
            ],
            out_specs=pl.BlockSpec((nb, C, hw), lambda n: (n, 0, 0)),
            compiler_params=_compiler_params(
                ("parallel",), 5 * block_vmem + (4 << 20)),
        )(x_flat, a_arr, w1t, w2t)
        return out_flat.reshape(N, C, H, W)

    # ---- two-pass fallback: tiled pooling, gate in JAX, tiled multiply ----
    if two_pass_tile_hw is not None:
        tile_hw = int(two_pass_tile_hw)                   # testing hook (x128)
    else:
        tile_hw = ((2 << 20) // max(1, c_pad * itemsize)) // _LANE * _LANE
        tile_hw = max(_LANE, tile_hw)
    if tile_hw >= hw:
        tile_hw = hw                                      # single full-width tile
    num_t = -(-hw // tile_hw)
    needs_mask = (hw % tile_hw) != 0
    block_vmem = c_pad * (-(-tile_hw // _LANE) * _LANE) * itemsize

    # Pass 1: spatial sums (partial last tile masked in-kernel).
    sums = pl.pallas_call(
        functools.partial(_pool_sum_kernel, hw=hw, tile_hw=tile_hw,
                          needs_mask=needs_mask),
        out_shape=jax.ShapeDtypeStruct((N, C, 1), jnp.float32),
        grid=(N, num_t),
        in_specs=[pl.BlockSpec((1, C, tile_hw), lambda n, t: (n, 0, t))],
        out_specs=pl.BlockSpec((1, C, 1), lambda n, t: (n, 0, 0)),
        compiler_params=_compiler_params(
            ("parallel", "arbitrary"), 3 * block_vmem + (4 << 20)),
    )(x_flat)

    # Gate math on the tiny (N, C) pooled array: negligible FLOPs -> plain JAX.
    pooled = sums[:, :, 0] * inv_hw                       # (N, C) f32
    y1 = pooled @ w1t                                     # (N, C//2)
    y1 = jnp.where(y1 >= 0.0, y1, a_arr * y1)             # PReLU
    gate = jax.nn.sigmoid(y1 @ w2t)[:, :, None]           # (N, C, 1) f32

    # Pass 2: tiled broadcast multiply (gate block constant along HW axis).
    out_flat = pl.pallas_call(
        _apply_gate_kernel,
        out_shape=jax.ShapeDtypeStruct((N, C, hw), dtype),
        grid=(N, num_t),
        in_specs=[
            pl.BlockSpec((1, C, tile_hw), lambda n, t: (n, 0, t)),
            pl.BlockSpec((1, C, 1), lambda n, t: (n, 0, 0)),
        ],
        out_specs=pl.BlockSpec((1, C, tile_hw), lambda n, t: (n, 0, t)),
        compiler_params=_compiler_params(
            ("parallel", "parallel"), 5 * block_vmem + (4 << 20)),
    )(x_flat, gate)
    return out_flat.reshape(N, C, H, W)


def ca_layer_ref(x_nchw, w1, w2, prelu_a):
    """Pure-JAX reference matching the PyTorch module."""
    pooled = jnp.mean(x_nchw, axis=(2, 3))                       # (N, C)
    y1 = pooled @ w1.T                                           # (N, C//2)
    a = jnp.asarray(prelu_a, jnp.float32).reshape(1, -1)
    y1 = jnp.where(y1 >= 0.0, y1, a * y1)
    y2 = jax.nn.sigmoid(y1 @ w2.T)                               # (N, C)
    return y2[:, :, None, None] * x_nchw


if __name__ == "__main__":
    N, C, H, W = 2, 4, 16, 16  # dim = 4  ->  dim//2 = 2
    key = jax.random.PRNGKey(0)
    kx, kw1, kw2 = jax.random.split(key, 3)

    x = jax.random.normal(kx, (N, C, H, W), dtype=jnp.float32)
    # Conv2d(dim, dim//2, 1, bias=False) -> (C//2, C); Conv2d(dim//2, dim, 1) -> (C, C//2)
    w1 = jax.random.normal(kw1, (C // 2, C), dtype=jnp.float32) * 0.1
    w2 = jax.random.normal(kw2, (C, C // 2), dtype=jnp.float32) * 0.1
    prelu_a = jnp.float32(0.25)  # PyTorch PReLU default init

    ref = ca_layer_ref(x, w1, w2, prelu_a)

    # Fused per-sample path (the default).
    out = jax.block_until_ready(ca_layer(x, w1, w2, prelu_a))
    assert out.shape == (N, C, H, W)
    assert out.dtype == x.dtype
    assert jnp.allclose(out, ref, atol=1e-5, rtol=1e-5)

    # Two-pass fallback path (pool -> gate in JAX -> broadcast multiply).
    out2 = jax.block_until_ready(ca_layer(x, w1, w2, prelu_a, force_two_pass=True))
    assert jnp.allclose(out2, ref, atol=1e-5, rtol=1e-5)

    # Non-128-aligned spatial size (hw = 400): fused path uses a full-HW block
    # (no wrapper pad/slice) ...
    Hn, Wn = 20, 20
    xn = jax.random.normal(jax.random.PRNGKey(1), (N, C, Hn, Wn), dtype=jnp.float32)
    refn = ca_layer_ref(xn, w1, w2, prelu_a)
    outn = jax.block_until_ready(ca_layer(xn, w1, w2, prelu_a))
    assert jnp.allclose(outn, refn, atol=1e-5, rtol=1e-5)
    # ... and the two-pass path masks the partial last HW tile in-kernel.
    outn2 = jax.block_until_ready(
        ca_layer(xn, w1, w2, prelu_a, force_two_pass=True, two_pass_tile_hw=128))
    assert jnp.allclose(outn2, refn, atol=1e-5, rtol=1e-5)

    # bf16 I/O stays bf16 on the wire (half the HBM bytes), f32 gate math.
    xb16 = x.astype(jnp.bfloat16)
    out_b = jax.block_until_ready(ca_layer(xb16, w1, w2, prelu_a))
    ref_b = ca_layer_ref(xb16.astype(jnp.float32), w1, w2, prelu_a)
    assert out_b.dtype == jnp.bfloat16
    assert jnp.allclose(out_b.astype(jnp.float32), ref_b, atol=2e-2, rtol=2e-2)

    print("KERNEL_OK")
</pallas_src>

<mosaic_0001>
module attributes {stable_mosaic.version = 11 : i64} {
  func.func @_ca_fused_kernel(%arg0: i32, %arg1: memref<1x4x256xf32, #tpu.memory_space<vmem>>, %arg2: memref<1x2xf32, #tpu.memory_space<vmem>>, %arg3: memref<4x2xf32, #tpu.memory_space<vmem>>, %arg4: memref<2x4xf32, #tpu.memory_space<vmem>>, %arg5: memref<1x4x256xf32, #tpu.memory_space<vmem>>) attributes {dimension_semantics = [#tpu.dimension_semantics<parallel>], iteration_bounds = array<i64: 2>, scalar_prefetch = 0 : i64, scratch_operands = 0 : i64, tpu.core_type = #tpu.core_type<tc>, window_params = [{transform_indices = @transform_0, window_bounds = array<i64: 1, 4, 256>}, {pipeline_mode = #tpu.pipeline_mode<synchronous>, transform_indices = @transform_1, window_bounds = array<i64: 1, 2>}, {pipeline_mode = #tpu.pipeline_mode<synchronous>, transform_indices = @transform_2, window_bounds = array<i64: 4, 2>}, {pipeline_mode = #tpu.pipeline_mode<synchronous>, transform_indices = @transform_3, window_bounds = array<i64: 2, 4>}, {transform_indices = @transform_4, window_bounds = array<i64: 1, 4, 256>}]} {
    %c0 = arith.constant 0 : index
    %c0_0 = arith.constant 0 : index
    %c0_1 = arith.constant 0 : index
    %0 = vector.load %arg1[%c0, %c0_0, %c0_1] : memref<1x4x256xf32, #tpu.memory_space<vmem>>, vector<1x4x256xf32>
    %cst = arith.constant dense<0.000000e+00> : vector<1x4xf32>
    %1 = vector.multi_reduction <add>, %0, %cst [2] : vector<1x4x256xf32> to vector<1x4xf32>
    %cst_2 = arith.constant 3.906250e-03 : f32
    %2 = vector.broadcast %cst_2 : f32 to vector<1x4xf32>
    %3 = arith.mulf %1, %2 : vector<1x4xf32>
    %c0_3 = arith.constant 0 : index
    %c0_4 = arith.constant 0 : index
    %4 = vector.load %arg3[%c0_3, %c0_4] : memref<4x2xf32, #tpu.memory_space<vmem>>, vector<4x2xf32>
    %cst_5 = arith.constant dense<0.000000e+00> : vector<1x2xf32>
    %5 = tpu.matmul %3, %4, %cst_5 {dimension_numbers = #tpu.dot_dimension_numbers<[1], [0], [0], [1], [0, 0, 1, 1], [], []>} : vector<1x4xf32>, vector<4x2xf32>, vector<1x2xf32> -> vector<1x2xf32>
    %cst_6 = arith.constant 0.000000e+00 : f32
    %6 = vector.broadcast %cst_6 : f32 to vector<1x2xf32>
    %7 = arith.cmpf oge, %5, %6 : vector<1x2xf32>
    %c0_7 = arith.constant 0 : index
    %c0_8 = arith.constant 0 : index
    %8 = vector.load %arg2[%c0_7, %c0_8] : memref<1x2xf32, #tpu.memory_space<vmem>>, vector<1x2xf32>
    %9 = arith.mulf %8, %5 : vector<1x2xf32>
    %10 = arith.select %7, %5, %9 : vector<1x2xi1>, vector<1x2xf32>
    %c0_9 = arith.constant 0 : index
    %c0_10 = arith.constant 0 : index
    %11 = vector.load %arg4[%c0_9, %c0_10] : memref<2x4xf32, #tpu.memory_space<vmem>>, vector<2x4xf32>
    %cst_11 = arith.constant dense<0.000000e+00> : vector<1x4xf32>
    %12 = tpu.matmul %10, %11, %cst_11 {dimension_numbers = #tpu.dot_dimension_numbers<[1], [0], [0], [1], [0, 0, 1, 1], [], []>} : vector<1x2xf32>, vector<2x4xf32>, vector<1x4xf32> -> vector<1x4xf32>
    %13 = arith.negf %12 : vector<1x4xf32>
    %14 = math.exp %13 : vector<1x4xf32>
    %cst_12 = arith.constant 1.000000e+00 : f32
    %15 = vector.broadcast %cst_12 : f32 to vector<1x4xf32>
    %16 = arith.addf %15, %14 : vector<1x4xf32>
    %17 = arith.divf %15, %16 : vector<1x4xf32>
    %c0_13 = arith.constant 0 : index
    %c0_14 = arith.constant 0 : index
    %c0_15 = arith.constant 0 : index
    %18 = vector.load %arg1[%c0_13, %c0_14, %c0_15] : memref<1x4x256xf32, #tpu.memory_space<vmem>>, vector<1x4x256xf32>
    %19 = vector.shape_cast %17 : vector<1x4xf32> to vector<1x4x1xf32>
    %20 = vector.broadcast %19 : vector<1x4x1xf32> to vector<1x4x256xf32>
    %21 = arith.mulf %18, %20 : vector<1x4x256xf32>
    %c0_16 = arith.constant 0 : index
    %c0_17 = arith.constant 0 : index
    %c0_18 = arith.constant 0 : index
    %22 = vector.load %arg5[%c0_16, %c0_17, %c0_18] : memref<1x4x256xf32, #tpu.memory_space<vmem>>, vector<1x4x256xf32>
    tpu.vector_store %arg5[%c0_16, %c0_17, %c0_18], %21 {strides = array<i32>} : memref<1x4x256xf32, #tpu.memory_space<vmem>>, vector<1x4x256xf32>,
    return
  }
  func.func @transform_0(%arg0: i32) -> (i32, i32, i32) {
    %c0_i32 = arith.constant 0 : i32
    %c0_i32_0 = arith.constant 0 : i32
    %c0_i32_1 = arith.constant 0 : i32
    return %arg0, %c0_i32, %c0_i32_0 : i32, i32, i32
  }
  func.func @transform_1(%arg0: i32) -> (i32, i32) {
    %c0_i32 = arith.constant 0 : i32
    %c0_i32_0 = arith.constant 0 : i32
    %c0_i32_1 = arith.constant 0 : i32
    return %c0_i32, %c0_i32_0 : i32, i32
  }
  func.func @transform_2(%arg0: i32) -> (i32, i32) {
    %c0_i32 = arith.constant 0 : i32
    %c0_i32_0 = arith.constant 0 : i32
    %c0_i32_1 = arith.constant 0 : i32
    return %c0_i32, %c0_i32_0 : i32, i32
  }
  func.func @transform_3(%arg0: i32) -> (i32, i32) {
    %c0_i32 = arith.constant 0 : i32
    %c0_i32_0 = arith.constant 0 : i32
    %c0_i32_1 = arith.constant 0 : i32
    return %c0_i32, %c0_i32_0 : i32, i32
  }
  func.func @transform_4(%arg0: i32) -> (i32, i32, i32) {
    %c0_i32 = arith.constant 0 : i32
    %c0_i32_0 = arith.constant 0 : i32
    %c0_i32_1 = arith.constant 0 : i32
    return %arg0, %c0_i32, %c0_i32_0 : i32, i32, i32
  }
}

</mosaic_0001>

<bundles_post_ra>
// kernel: tpu_custom_call.1
= control target key start
LH: loop header
LB: loop body
LE: loop exit
PB: predicated region body
PF: predicated region fallthrough
CT: control target
= control target key end

     0   :  { %9 = vsyncpa [#allocation3], 0  ;;  %s892_s0 = inlined_call_operand.hbm [shape: f32[2,4,256], index: 0, kind: input, shape index: {}]   ;;  %s893_s1 = inlined_call_operand.vmem [shape: f32[1,2], index: 1, kind: input, shape index: {}]   ;;  %s894_s2 = inlined_call_operand.vmem [shape: f32[4,2], index: 2, kind: input, shape index: {}]   ;;  %s895_s3 = inlined_call_operand.vmem [shape: f32[2,4], index: 3, kind: input, shape index: {}]   ;;  %s896_s4 = inlined_call_operand.hbm [shape: f32[2,4,256], index: 4, kind: output, shape index: {}]  }
   0x1   :  { %11 = vsyncpa [#allocation3 + $0x1], 0 }
   0x2   :  { %12 = vsyncpa [#allocation4], 0 }
   0x3   :  { %14 = vsyncpa [#allocation4 + $0x1], 0  ;;  %s718_s15 = smov 0   ;;  %s720_s16 = smov 0  }
   0x4   :  { %s722_s17 = smov 0   ;;  %s724_s18 = smov 0  }
   0x5 LB: > { %s739_s19 = sadd.s32 4294967295, %s686_s18   ;;  %s501_s20 = sadd.s32 4294967294, %s686_s18   ;;  %s686_s18 = sphi %s724_s18, %s911_s18   ;;  %s682_s17 = sphi %s722_s17, %s910_s17   ;;  %s678_s16 = sphi %s720_s16, %s909_s16   ;;  %s674_s15 = sphi %s718_s15, %s908_s15  }
   0x6   : > { %s743_s21 = sadd.s32 1, %s686_s18   ;;  %s27_s22 = sadd.s32 1, %s682_s17 }
   0x7   : > { %s24_s23 = ssub.s32 %s686_s18, %s743_s21  ;;  %p34_p0 = scmp.ne.s32.totalorder %s682_s17, %s678_s16 }
   0x8   : > { %p25_p1 = scmp.eq.s32.totalorder %s24_s23, 0  ;;  %p35_p2 = scmp.eq.s32.totalorder %s686_s18, 0 }
   0x9   : > { %p40_p3 = scmp.ne.s32.totalorder %s678_s16, %s674_s15  ;;  %p41_p4 = scmp.eq.s32.totalorder %s739_s19, 0 }
   0xa   : > { %s755_s24 = scalar_select %p25_p1, %s682_s17, %s27_s22  }
   0xb   : > { %p757_p5 = por %p35_p2, %p34_p0  ;;  %p761_p6 = por %p41_p4, %p40_p3 }
   0xc   : > { %p127_p7 = scmp.eq.s32.totalorder %s739_s19, 1  ;;  %p133_p8 = scmp.eq.s32.totalorder %s501_s20, 1 }
   0xd   : > { %p548_p10 = scmp.lt.s32.totalorder %s686_s18, 2  ;;  %s162_s29 = sand.u32 1, %s682_s17  }
   0xe   : > { %p768_p11 = por %p127_p7, %p34_p0  ;;  %p772_p12 = por %p133_p8, %p40_p3 }
   0xf   : > { %s520_s30 = sshll.u32 %s686_s18, 7  ;;  %s504_s5 = sshll.u32 %s162_s29, 3 }
  0x10   : > { %s900_s27 = scalar_select %p768_p11, 1, 0 }
  0x11   : > { %s901_s28 = scalar_select %p772_p12, 1, 0 }
  0x12   : > { %s781_s8 = scalar_lea.hbm %s892_s0, %s520_s30  ;;  %s166_s9 = scalar_lea.vmem [#allocation2], %s504_s5 }
  0x13   : > { %s174_s10 = sshll.u32 %s166_s9, 4  ;;  %p785_p13 = pnand %p548_p10, %p757_p5  ;;  %s789_s10 = int_to_ptr.vmem [resolvable:$true] %s174_s10 }
  0x14   : > { %s163_s12 = scalar_lea.sflag [#allocation3], %s162_s29  ;;  %s590_s13 = scalar_lea.hbm %s781_s8, 128 }
  0x15   : > { %p591_p2 = scmp.ne.s32.totalorder %s781_s8, %s590_s13  ;;  %p592_p3 = pneg %p785_p13 }
  0x16   : > { %s595_s22 = scalar_lea.hbm %s892_s0, 256  ;;  %p596_p5 = scmp.lt.u32.totalorder %s781_s8, %s892_s0 }
  0x17   : > { %p593_p4 = pnand %p592_p3, %p591_p2  ;;  %p597_p8 = scmp.lt.u32.totalorder %s595_s22, %s590_s13 }
  0x18   : > { %p599_p9 = scmp.lt.u32.totalorder %s590_s13, %s781_s8 }
  0x19   : > { %p594_p7 = pneg %p593_p4  ;;  %p598_p10 = por %p597_p8, %p596_p5 }
  0x1b   : > { %p600_p0 = por %p599_p9, %p598_p10 }
  0x1d   : > { %p601_p1 = pnand %p600_p0, %p594_p7 }
  0x1f   : > { %604 = shalt.err (!%p601_p1)
}
  0x20   : > { %s605_s29 = scalar_lea.vmem %s789_s10, 128  ;;  %s688_s30 = smov [#allocation2]  }
  0x21   : > { %p606_p2 = scmp.ne.s32.totalorder %s789_s10, %s605_s29  ;;  %s610_s5 = sshll.u32 %s688_s30, 4  ;;  %s611_s5 = int_to_ptr.vmem [resolvable:$false] %s610_s5 }
  0x22   : > { %s612_s6 = scalar_lea.vmem %s611_s5, 256  ;;  %p613_p11 = scmp.lt.s32.totalorder %s789_s10, %s611_s5 }
  0x23   : > { %p608_p4 = pnand %p606_p2, %p592_p3  ;;  %p614_p5 = scmp.lt.s32.totalorder %s612_s6, %s605_s29 }
  0x25   : > { %p609_p12 = pneg %p608_p4  ;;  %p615_p8 = por %p614_p5, %p613_p11 }
  0x27   : > { %p616_p9 = pnand %p615_p8, %p609_p12 }
  0x29   : > { %619 = shalt.err (!%p616_p9)
}
  0x2a   : > { %543 = dma.hbm_to_vmem [thread:$0]  (!%p785_p13), %s781_s8, 128, %s789_s10, %s163_s12  }
  0x2b   : > { %p903_p0 = scmp.lt.s32.totalorder %s686_s18, 3  ;;  %p904_p1 = scmp.ge.s32.totalorder %s686_s18, 1 }
  0x2d   : > { %p180_p3 = pnand %p904_p1, %p903_p0 }
  0x2e   : > { %s823_s7 = sand.u32 (!%p180_p3), 1, %s678_s16  }
  0x2f   : > { %183 = sbr.rel (%p180_p3) target bundleno = 795 (0x31b), region = 36  ;;  %s508_s9 = sshll.u32 (!%p180_p3), %s823_s7, 3 }
  0x30   : > { %s186_s13 = scalar_lea.sflag (!%p180_p3), [#allocation3], %s823_s7  ;;  %s189_s11 = scalar_lea.vmem (!%p180_p3), [#allocation2], %s508_s9 }
  0x36   : > { %665 = dma.done.wait (%p761_p6), %s186_s13, 128  }
  0x37   : > { %667 = vsyncadd (%p761_p6), %s186_s13, 4294967168  ;;  %vm218_vm0 = vcmask 1043456   ;;  %v214_v0 = vld [vmem:[%s189_s11] sm:$0xff]  ;;  %v689_v5 = vmov 0.0   ;;  %vm690_vm1 = vmmov 0   ;;  %v227_v7 = vlaneseq  ;;  %s521_s22 = sshll.u32 %s739_s19, 7 }
  0x38   : > { %v216_v1 = vcombine.high %v214_v0, %v214_v0  ;;  %v219_v2 = vsel %vm218_vm0, %v214_v0, 0.0  ;;  %526 = vmatprep.subr.mxu0 %v689_v5  ;;  %v225_v6 = vld [vmem:[%s894_s2] sm:$0xf]  ;;  %531 = vmatprep.subr.mxu1 %v689_v5  ;;  %vm233_vm2 = vcmask 31744   ;;  %vm318_vm3 = vcmask 1041408   ;;  %s213_s23 = scalar_lea.vmem [#allocation5], %s508_s9  ;;  %s848_s5 = scalar_lea.hbm %s896_s4, %s521_s22 }
  0x39   : > { %527 = vmatpush3.msk.msra.mxu0 %vm218_vm0, %v225_v6  ;;  %528 = vmatprep.mubr.msk.f32.mxu0 %vm690_vm1, %v689_v5  ;;  %v228_v8 = vand.u32 127, %v227_v7  ;;  %v230_v9 = vshrl.u32 %v227_v7, 7  ;;  %v313_v14 = vld [vmem:[%s895_s3] sm:$0x3]  ;;  %vm314_vm5 = vcmask 15360   ;;  %s431_s25 = sshll.u32 %s213_s23, 4  ;;  %s850_s25 = int_to_ptr.vmem [resolvable:$true] %s431_s25 }
  0x3a   : > { %v220_v3 = vsel %vm218_vm0, %v216_v1, 0.0  ;;  %533 = vmatprep.mubr.msk.f32.mxu1 %vm690_vm1, %v689_v5  ;;  %532 = vmatpush3.msk.msra.mxu1 %vm318_vm3, %v313_v14  ;;  %v310_v15 = vld [vmem:[%s893_s1] sm:$0x1]  ;;  %v691_v28 = vmov 839922192   ;;  %s417_s6 = scalar_lea.sflag [#allocation4], %s823_s7 }
  0x3b   : > { %v221_v4 = vadd.f32 %v220_v3, %v219_v2  ;;  %v231_v10 = vsub.s32 %v228_v8, %v230_v9  ;;  %v400_v25 = vsub.s32 0, %v230_v9  ;;  %v407_v29 = vunpack.c.l.s4 %v691_v28  ;;  %s620_s13 = scalar_lea.vmem %s850_s25, 128  ;;  %p905_p11 = scmp.ne.s32.totalorder %s900_s27, 0 }
  0x3c   : > { %p621_p6 = scmp.ne.s32.totalorder %s850_s25, %s620_s13  ;;  %s692_s19 = smov [#allocation5]  }
  0x3d   : > { %222 = vadd.xlane.f32.xlu0 %v221_v4  ;;  %v408_v30 = vunpack.c.0.s8 %v407_v29  ;;  %s624_s9 = sshll.u32 %s692_s19, 4  ;;  %s625_s9 = int_to_ptr.vmem [resolvable:$false] %s624_s9 }
  0x3e   : > { %p622_p12 = pnand %p621_p6, %p905_p11  ;;  %s626_s11 = scalar_lea.vmem %s625_s9, 256 }
  0x3f   : > { %v411_v31 = vsub.s32 %v408_v30, %v230_v9  ;;  %p627_p7 = scmp.lt.s32.totalorder %s850_s25, %s625_s9  ;;  %p628_p10 = scmp.lt.s32.totalorder %s626_s11, %s620_s13 }
  0x40   : > { %p623_p13 = pneg %p622_p12 }
  0x41   : > { %p629_p2 = por %p628_p10, %p627_p7 }
  0x43   : > { %p630_p4 = pnand %p629_p2, %p623_p13 }
  0xca   : > { %v223_v11 = vpop.xlane.xlu0 %222 }
  0xcb   : > { %v224_v12 = vmul.f32 0.00390625, %v223_v11 }
  0xcd   : > { %v232_v13 = vrot.slane %v224_v12, %v231_v10 }
  0xcf   : > { %529 = vmatmul.mubr.msk.f32.vlgmr.msra.gmra.mrb[0].mxu0 %vm233_vm2, %v232_v13 }
 0x1a2   : > { %v305_v16 = vpop.f32.mrb[0].mxu0 }
 0x1a3   : > { %vm309_vm4 = vcmp.ge.f32.partialorder %v305_v16, 0.0  ;;  %v311_v17 = vmul.f32 %v310_v15, %v305_v16  ;;  %v530_v18 = vpop.f32.mrb[1].mxu0 }
 0x1a5   : > { %v312_v19 = vsel %vm309_vm4, %v305_v16, %v311_v17 }
 0x1a6   : > { %534 = vmatmul.mubr.msk.f32.vlgmr.msra.gmra.mrb[0].mxu1 %vm314_vm5, %v312_v19 }
 0x279   : > { %v388_v20 = vpop.f32.mrb[0].mxu1 }
 0x27a   : > { %v514_v21 = vmul.f32 -1.442695, %v388_v20  ;;  %v535_v22 = vpop.f32.mrb[1].mxu1 }
 0x27c   : > { %586 = vpow2.f32 %v514_v21 }
 0x286   : > { %v587_v23 = vpop.eup %586 }
 0x287   : > { %v395_v24 = vadd.f32 1.0, %v587_v23 }
 0x289   : > { %588 = vrcp.f32 %v395_v24 }
 0x293   : > { %v589_v26 = vpop.eup %588 }
 0x294   : > { %v401_v27 = vrot.slane %v589_v26, %v400_v25 }
 0x296   : > { %403 = vbcast.lane.b32.xlu0 %v401_v27, 256 }
 0x308   : > { %v404_v32 = vpop.permute.xlu0 %403 }
 0x309   : > { %v412_v33 = vrot.slane %v404_v32, %v411_v31 }
 0x30b   : > { %v414_v34 = vmul.f32 %v412_v33, %v214_v0 }
 0x30d   : > { %415 = vst [vmem:[%s213_s23] sm:$0xff] %v414_v34 }
 0x30e   : > { %633 = shalt.err (!%p630_p4)
}
 0x30f   : > { %s634_s7 = scalar_lea.hbm %s848_s5, 128  ;;  %s638_s26 = scalar_lea.hbm %s896_s4, 256 }
 0x310   : > { %p635_p5 = scmp.ne.s32.totalorder %s848_s5, %s634_s7  ;;  %p639_p0 = scmp.lt.u32.totalorder %s848_s5, %s896_s4 }
 0x311   : > { %p640_p1 = scmp.lt.u32.totalorder %s638_s26, %s634_s7  ;;  %p642_p6 = scmp.lt.u32.totalorder %s634_s7, %s848_s5 }
 0x312   : > { %p636_p8 = pnand %p635_p5, %p905_p11 }
 0x313   : > { %p641_p3 = por %p640_p1, %p639_p0 }
 0x314   : > { %p637_p9 = pneg %p636_p8 }
 0x315   : > { %p643_p12 = por %p642_p6, %p641_p3 }
 0x317   : > { %p644_p13 = pnand %p643_p12, %p637_p9 }
 0x319   : > { %647 = shalt.err (!%p644_p13)
}
 0x31a   : > { %538 = dma.vmem_to_hbm [thread:$0]  (%p905_p11), %s850_s25, 128, %s848_s5, %s417_s6  }
 0x31b PF: > { %s443_s20 = sand.u32 1, %s674_s15   ;;  %p906_p7 = scmp.ne.s32.totalorder %s901_s28, 0 }
 0x31c   : > { %p907_p10 = scmp.ge.s32.totalorder %s686_s18, 2  ;;  %s444_s22 = scalar_lea.sflag [#allocation4], %s443_s20 }
 0x31e   : > { %p545_p2 = pnand %p907_p10, %p906_p7 }
 0x320   : > { %669 = dma.done.wait (!%p545_p2), %s444_s22, 128  }
 0x321   : > { %671 = vsyncadd (!%p545_p2), %s444_s22, 4294967168  ;;  %p17_p4 = scmp.ge.s32.totalorder %s743_s21, 4   ;;  %s908_s15 = smov %s678_s16 }
 0x322   : > { %s909_s16 = smov %s682_s17  ;;  %s910_s17 = smov %s755_s24 }
 0x323   : > { %s911_s18 = smov %s743_s21  ;;  %19 = sbr.rel (!%p17_p4) target bundleno = 5 (0x5), region = 81 }
 0x32a   :  { %449 = vsyncpa [#allocation3], 1 }
 0x32b   :  { %451 = vsyncpa [#allocation3 + $0x1], 1 }
 0x32c   :  { %452 = vsyncpa [#allocation4], 1 }
 0x32d   :  { %454 = vsyncpa [#allocation4 + $0x1], 1 }

</bundles_post_ra>
